<compile_context>
chip_gen: v7x
topology: tpu7x:2x2x1
jax: 0.10.0
libtpu: 0.0.40
codegen_flags: <defaults>
</compile_context>

<pallas_src>
import functools

import jax
import jax.numpy as jnp
from jax.experimental import pallas as pl
from jax.experimental.pallas import tpu as pltpu

EPS = 1e-5
MOMENTUM = 0.9
LANE = 128
_TARGET_BLOCK_BYTES = 1 << 20      # ~1 MiB x-blocks (0.5-2 MiB sweet spot)
_MAX_BLOCK_BYTES = 4 << 20         # hard per-block cap
_MAX_LANE_TILE = 4096              # bounds the static slab-accumulation unroll


def _phys_vmem_bytes():
    try:
        return int(pltpu.get_tpu_info().vmem_capacity_bytes)
    except Exception:
        return 64 << 20            # conservative: v7x per-TC VMEM


def _pick_lane_tile(hw, c, itemsize):
    """Largest multiple-of-128 divisor of hw with a block <= target bytes."""
    cands = [t for t in range(LANE, min(hw, _MAX_LANE_TILE) + 1, LANE)
             if hw % t == 0]
    if not cands:
        return hw
    fit = [t for t in cands if c * t * itemsize <= _TARGET_BLOCK_BYTES]
    return max(fit) if fit else min(cands)


def _pick_batch_tile(n, c, t, itemsize):
    """Largest divisor of n keeping the (tn, c, t) block <= target bytes."""
    divs = [d for d in range(1, n + 1) if n % d == 0]
    fit = [d for d in divs if d * c * t * itemsize <= _TARGET_BLOCK_BYTES]
    return max(fit) if fit else 1


# ---------------------------------------------------------------------------
# Fused single-sweep kernel (x resident in VMEM).
# ---------------------------------------------------------------------------
def _bn_fused_kernel(x_ref, gamma_ref, beta_ref, mm_ref, mv_ref,
                     y_ref, new_mm_ref, new_mv_ref, *, m_total):
    x = x_ref[...].astype(jnp.float32)                        # (N, C, HW)
    inv_m = 1.0 / m_total
    mean = jnp.sum(jnp.sum(x, axis=0), axis=-1, keepdims=True) * inv_m  # (C,1)
    xc = x - mean[None]                                       # centered
    var = jnp.sum(jnp.sum(xc * xc, axis=0), axis=-1, keepdims=True) * inv_m
    inv_std = jax.lax.rsqrt(var + EPS)

    gamma = gamma_ref[...].astype(jnp.float32)                # (C, 1)
    beta = beta_ref[...].astype(jnp.float32)
    scale = gamma * inv_std
    y_ref[...] = (xc * scale[None] + beta[None]).astype(y_ref.dtype)

    mm = mm_ref[...].astype(jnp.float32)
    mv = mv_ref[...].astype(jnp.float32)
    new_mm_ref[...] = MOMENTUM * mm + (1.0 - MOMENTUM) * mean
    new_mv_ref[...] = MOMENTUM * mv + (1.0 - MOMENTUM) * var


# ---------------------------------------------------------------------------
# Tiled pass 1: per-batch-block partial sum / sum-of-squares.
# ---------------------------------------------------------------------------
def _bn_partial_kernel(x_ref, psum_ref, psq_ref, sum_acc, sq_acc):
    # x_ref: (TN, C, T) tile ; psum/psq: (1, C, 1) ; scratch: (C, LANE) f32.
    k = pl.program_id(1)

    @pl.when(k == 0)
    def _init():
        sum_acc[...] = jnp.zeros_like(sum_acc)
        sq_acc[...] = jnp.zeros_like(sq_acc)

    x = x_ref[...].astype(jnp.float32)            # (TN, C, T)
    xs = jnp.sum(x, axis=0)                       # (C, T)  VALU adds
    x2s = jnp.sum(x * x, axis=0)                  # (C, T)

    t = xs.shape[-1]
    n_full = t // LANE
    for j in range(n_full):                       # lane-tile aligned slabs
        sl = slice(j * LANE, (j + 1) * LANE)
        sum_acc[...] += xs[:, sl]
        sq_acc[...] += x2s[:, sl]
    rem = t - n_full * LANE
    if rem:                                       # only for full-extent tiles
        sum_acc[:, :rem] += xs[:, n_full * LANE:]
        sq_acc[:, :rem] += x2s[:, n_full * LANE:]

    @pl.when(k == pl.num_programs(1) - 1)
    def _finalize():                              # single XLU reduce per block
        psum_ref[...] = jnp.sum(sum_acc[...], axis=1, keepdims=True)[None]
        psq_ref[...] = jnp.sum(sq_acc[...], axis=1, keepdims=True)[None]


# ---------------------------------------------------------------------------
# Tiled pass 2: y = x * scale + shift.
# ---------------------------------------------------------------------------
def _bn_apply_kernel(x_ref, scale_ref, shift_ref, y_ref):
    # x_ref / y_ref: (TN, C, T) ; scale/shift: (C, 1)
    x = x_ref[...].astype(jnp.float32)
    scale = scale_ref[...][None]                  # (1, C, 1)
    shift = shift_ref[...][None]
    y_ref[...] = (x * scale + shift).astype(y_ref.dtype)


def batch_norm_pallas(x, gamma, beta, moving_mean, moving_var, *,
                      force_tiled=False):
    """x: (N, C, H, W) NCHW. gamma/beta/moving_*: (1, C, 1, 1).

    Returns (Y NCHW, new_moving_mean (1,C,1,1), new_moving_var (1,C,1,1)).
    Training-mode forward (the grad-enabled path of the reference module).
    """
    N, C, H, W = x.shape
    HW = H * W
    M = N * HW
    itemsize = x.dtype.itemsize
    phys = _phys_vmem_bytes()

    x3 = x.reshape(N, C, HW)                      # free layout change
    g2 = gamma.reshape(C, 1).astype(jnp.float32)
    b2 = beta.reshape(C, 1).astype(jnp.float32)
    mm2 = moving_mean.reshape(C, 1).astype(jnp.float32)
    mv2 = moving_var.reshape(C, 1).astype(jnp.float32)

    # ---- Fused path: x resident in VMEM -> 1R + 1W of x HBM traffic. -------
    xf32_bytes = x.size * 4
    fused_bytes = 2 * x3.nbytes + 3 * xf32_bytes + (2 << 20)
    if (not force_tiled) and fused_bytes <= phys // 2:
        vmem_limit = int(min(max(32 << 20, fused_bytes + (8 << 20)),
                             phys * 3 // 4))
        full_spec = pl.BlockSpec((N, C, HW), lambda i: (0, 0, 0))
        col_spec = pl.BlockSpec((C, 1), lambda i: (0, 0))
        y3, new_mm, new_mv = pl.pallas_call(
            functools.partial(_bn_fused_kernel, m_total=float(M)),
            grid=(1,),
            in_specs=[full_spec, col_spec, col_spec, col_spec, col_spec],
            out_specs=(full_spec, col_spec, col_spec),
            out_shape=(jax.ShapeDtypeStruct((N, C, HW), x.dtype),
                       jax.ShapeDtypeStruct((C, 1), jnp.float32),
                       jax.ShapeDtypeStruct((C, 1), jnp.float32)),
            compiler_params=pltpu.CompilerParams(
                dimension_semantics=("arbitrary",),
                vmem_limit_bytes=vmem_limit),
        )(x3, g2, b2, mm2, mv2)
        return (y3.reshape(N, C, H, W),
                new_mm.reshape(1, C, 1, 1),
                new_mv.reshape(1, C, 1, 1))

    # ---- Tiled two-pass path (x streamed from HBM: 2R + 1W). ---------------
    pad = 0
    HW_p = HW
    if HW % LANE != 0 and C * HW * itemsize > _MAX_BLOCK_BYTES:
        # Rare: large non-128-divisible spatial extent.  Zero-pad lanes
        # (zeros are neutral for sum/sumsq); padded Y columns sliced off.
        pad = (-HW) % LANE
        HW_p = HW + pad
        x3 = jnp.pad(x3, ((0, 0), (0, 0), (0, pad)))

    if HW_p % LANE == 0:
        t = _pick_lane_tile(HW_p, C, itemsize)    # lane-dense, multiple of 128
    else:
        t = HW_p                                  # small full extent (legal)
    tn = _pick_batch_tile(N, C, t, itemsize)      # grow block over batch too
    n_nb = N // tn
    n_hw = HW_p // t
    block_bytes = tn * C * t * itemsize
    vmem_limit = int(min(max(32 << 20, 6 * block_bytes + (4 << 20)),
                         phys * 3 // 4))

    x_spec = pl.BlockSpec((tn, C, t), lambda i, k: (i, 0, k))
    part_spec = pl.BlockSpec((1, C, 1), lambda i, k: (i, 0, 0))
    col_spec = pl.BlockSpec((C, 1), lambda i, k: (0, 0))

    # Pass 1: per-batch-block partial sums (batch axis megacore-parallel).
    psum, psq = pl.pallas_call(
        _bn_partial_kernel,
        grid=(n_nb, n_hw),
        in_specs=[x_spec],
        out_specs=(part_spec, part_spec),
        out_shape=(jax.ShapeDtypeStruct((n_nb, C, 1), jnp.float32),
                   jax.ShapeDtypeStruct((n_nb, C, 1), jnp.float32)),
        scratch_shapes=[pltpu.VMEM((C, LANE), jnp.float32),
                        pltpu.VMEM((C, LANE), jnp.float32)],
        compiler_params=pltpu.CompilerParams(
            dimension_semantics=("parallel", "arbitrary"),
            vmem_limit_bytes=vmem_limit),
    )(x3)

    # Tiny (C,)-sized combine + affine / running-stat math in plain JAX.
    inv_m = 1.0 / M
    mean = jnp.sum(psum, axis=0) * inv_m                       # (C, 1)
    # TODO(synk): E[x^2]-E[x]^2 can cancel when |mean| >> std; a shifted or
    # Welford-style accumulation would be more robust for extreme activations.
    var = jnp.maximum(jnp.sum(psq, axis=0) * inv_m - mean * mean, 0.0)  # biased
    inv_std = jax.lax.rsqrt(var + EPS)
    scale = g2 * inv_std                                       # (C, 1)
    shift = b2 - mean * scale
    new_mm = MOMENTUM * mm2 + (1.0 - MOMENTUM) * mean
    new_mv = MOMENTUM * mv2 + (1.0 - MOMENTUM) * var

    # Pass 2: fused multiply-add, fully parallel grid, lane-dense stores.
    y3 = pl.pallas_call(
        _bn_apply_kernel,
        grid=(n_nb, n_hw),
        in_specs=[x_spec, col_spec, col_spec],
        out_specs=x_spec,
        out_shape=jax.ShapeDtypeStruct((N, C, HW_p), x.dtype),
        compiler_params=pltpu.CompilerParams(
            dimension_semantics=("parallel", "parallel"),
            vmem_limit_bytes=vmem_limit),
    )(x3, scale, shift)

    if pad:
        y3 = y3[:, :, :HW]
    return (y3.reshape(N, C, H, W),
            new_mm.reshape(1, C, 1, 1),
            new_mv.reshape(1, C, 1, 1))


if __name__ == "__main__":
    def ref_bn(x, gamma, beta, mm, mv):
        mean = jnp.mean(x, axis=(0, 2, 3), keepdims=True)
        var = jnp.mean((x - mean) ** 2, axis=(0, 2, 3), keepdims=True)
        y = gamma * (x - mean) / jnp.sqrt(var + EPS) + beta
        return (y,
                MOMENTUM * mm + (1.0 - MOMENTUM) * mean,
                MOMENTUM * mv + (1.0 - MOMENTUM) * var)

    key = jax.random.PRNGKey(0)
    N, C, H, W = 2, 4, 16, 16
    x = jax.random.normal(key, (N, C, H, W), dtype=jnp.float32)
    gamma = jnp.ones((1, C, 1, 1), jnp.float32)
    beta = jnp.zeros((1, C, 1, 1), jnp.float32)
    moving_mean = jnp.zeros((1, C, 1, 1), jnp.float32)
    moving_var = jnp.ones((1, C, 1, 1), jnp.float32)

    # Fused (VMEM-resident) path.
    y, new_mm, new_mv = batch_norm_pallas(x, gamma, beta, moving_mean, moving_var)
    jax.block_until_ready((y, new_mm, new_mv))
    y_r, mm_r, mv_r = ref_bn(x, gamma, beta, moving_mean, moving_var)
    assert jnp.allclose(y, y_r, atol=1e-5, rtol=1e-5)
    assert jnp.allclose(new_mm, mm_r, atol=1e-5, rtol=1e-5)
    assert jnp.allclose(new_mv, mv_r, atol=1e-5, rtol=1e-5)

    # Tiled two-pass path (forced), incl. a non-128-multiple HW shape.
    for shape in ((4, 8, 16, 16), (2, 4, 8, 8)):
        n2, c2, h2, w2 = shape
        x2 = jax.random.normal(jax.random.PRNGKey(1), shape, dtype=jnp.float32)
        g = jnp.ones((1, c2, 1, 1), jnp.float32)
        b = jnp.zeros((1, c2, 1, 1), jnp.float32)
        m0 = jnp.zeros((1, c2, 1, 1), jnp.float32)
        v0 = jnp.ones((1, c2, 1, 1), jnp.float32)
        y2, nmm2, nmv2 = batch_norm_pallas(x2, g, b, m0, v0, force_tiled=True)
        jax.block_until_ready((y2, nmm2, nmv2))
        y2r, mm2r, mv2r = ref_bn(x2, g, b, m0, v0)
        assert jnp.allclose(y2, y2r, atol=1e-5, rtol=1e-5)
        assert jnp.allclose(nmm2, mm2r, atol=1e-5, rtol=1e-5)
        assert jnp.allclose(nmv2, mv2r, atol=1e-5, rtol=1e-5)

    print("KERNEL_OK")
</pallas_src>

<mosaic_0001>
module attributes {stable_mosaic.version = 11 : i64} {
  func.func @_bn_fused_kernel(%arg0: i32, %arg1: memref<2x4x256xf32, #tpu.memory_space<vmem>>, %arg2: memref<4x1xf32, #tpu.memory_space<vmem>>, %arg3: memref<4x1xf32, #tpu.memory_space<vmem>>, %arg4: memref<4x1xf32, #tpu.memory_space<vmem>>, %arg5: memref<4x1xf32, #tpu.memory_space<vmem>>, %arg6: memref<2x4x256xf32, #tpu.memory_space<vmem>>, %arg7: memref<4x1xf32, #tpu.memory_space<vmem>>, %arg8: memref<4x1xf32, #tpu.memory_space<vmem>>) attributes {dimension_semantics = [#tpu.dimension_semantics<arbitrary>], iteration_bounds = array<i64: 1>, scalar_prefetch = 0 : i64, scratch_operands = 0 : i64, tpu.core_type = #tpu.core_type<tc>, window_params = [{pipeline_mode = #tpu.pipeline_mode<synchronous>, transform_indices = @transform_0, window_bounds = array<i64: 2, 4, 256>}, {pipeline_mode = #tpu.pipeline_mode<synchronous>, transform_indices = @transform_1, window_bounds = array<i64: 4, 1>}, {pipeline_mode = #tpu.pipeline_mode<synchronous>, transform_indices = @transform_2, window_bounds = array<i64: 4, 1>}, {pipeline_mode = #tpu.pipeline_mode<synchronous>, transform_indices = @transform_3, window_bounds = array<i64: 4, 1>}, {pipeline_mode = #tpu.pipeline_mode<synchronous>, transform_indices = @transform_4, window_bounds = array<i64: 4, 1>}, {pipeline_mode = #tpu.pipeline_mode<synchronous>, transform_indices = @transform_5, window_bounds = array<i64: 2, 4, 256>}, {pipeline_mode = #tpu.pipeline_mode<synchronous>, transform_indices = @transform_6, window_bounds = array<i64: 4, 1>}, {pipeline_mode = #tpu.pipeline_mode<synchronous>, transform_indices = @transform_7, window_bounds = array<i64: 4, 1>}]} {
    %c0 = arith.constant 0 : index
    %c0_0 = arith.constant 0 : index
    %c0_1 = arith.constant 0 : index
    %0 = vector.load %arg1[%c0, %c0_0, %c0_1] : memref<2x4x256xf32, #tpu.memory_space<vmem>>, vector<2x4x256xf32>
    %cst = arith.constant dense<0.000000e+00> : vector<4x256xf32>
    %1 = vector.multi_reduction <add>, %0, %cst [0] : vector<2x4x256xf32> to vector<4x256xf32>
    %cst_2 = arith.constant dense<0.000000e+00> : vector<4xf32>
    %2 = vector.multi_reduction <add>, %1, %cst_2 [1] : vector<4x256xf32> to vector<4xf32>
    %3 = vector.shape_cast %2 : vector<4xf32> to vector<4x1xf32>
    %cst_3 = arith.constant 0.001953125 : f32
    %4 = vector.broadcast %cst_3 : f32 to vector<4x1xf32>
    %5 = arith.mulf %3, %4 : vector<4x1xf32>
    %6 = vector.shape_cast %5 : vector<4x1xf32> to vector<1x4x1xf32>
    %7 = vector.broadcast %6 : vector<1x4x1xf32> to vector<2x4x256xf32>
    %8 = arith.subf %0, %7 : vector<2x4x256xf32>
    %9 = arith.mulf %8, %8 : vector<2x4x256xf32>
    %cst_4 = arith.constant dense<0.000000e+00> : vector<4x256xf32>
    %10 = vector.multi_reduction <add>, %9, %cst_4 [0] : vector<2x4x256xf32> to vector<4x256xf32>
    %cst_5 = arith.constant dense<0.000000e+00> : vector<4xf32>
    %11 = vector.multi_reduction <add>, %10, %cst_5 [1] : vector<4x256xf32> to vector<4xf32>
    %12 = vector.shape_cast %11 : vector<4xf32> to vector<4x1xf32>
    %cst_6 = arith.constant 0.001953125 : f32
    %13 = vector.broadcast %cst_6 : f32 to vector<4x1xf32>
    %14 = arith.mulf %12, %13 : vector<4x1xf32>
    %cst_7 = arith.constant 9.99999974E-6 : f32
    %15 = vector.broadcast %cst_7 : f32 to vector<4x1xf32>
    %16 = arith.addf %14, %15 : vector<4x1xf32>
    %17 = math.rsqrt %16 : vector<4x1xf32>
    %c0_8 = arith.constant 0 : index
    %c0_9 = arith.constant 0 : index
    %18 = vector.load %arg2[%c0_8, %c0_9] : memref<4x1xf32, #tpu.memory_space<vmem>>, vector<4x1xf32>
    %c0_10 = arith.constant 0 : index
    %c0_11 = arith.constant 0 : index
    %19 = vector.load %arg3[%c0_10, %c0_11] : memref<4x1xf32, #tpu.memory_space<vmem>>, vector<4x1xf32>
    %20 = arith.mulf %18, %17 : vector<4x1xf32>
    %21 = vector.shape_cast %20 : vector<4x1xf32> to vector<1x4x1xf32>
    %22 = vector.broadcast %21 : vector<1x4x1xf32> to vector<2x4x256xf32>
    %23 = arith.mulf %8, %22 : vector<2x4x256xf32>
    %24 = vector.shape_cast %19 : vector<4x1xf32> to vector<1x4x1xf32>
    %25 = vector.broadcast %24 : vector<1x4x1xf32> to vector<2x4x256xf32>
    %26 = arith.addf %23, %25 : vector<2x4x256xf32>
    %c0_12 = arith.constant 0 : index
    %c0_13 = arith.constant 0 : index
    %c0_14 = arith.constant 0 : index
    %27 = vector.load %arg6[%c0_12, %c0_13, %c0_14] : memref<2x4x256xf32, #tpu.memory_space<vmem>>, vector<2x4x256xf32>
    tpu.vector_store %arg6[%c0_12, %c0_13, %c0_14], %26 {strides = array<i32>} : memref<2x4x256xf32, #tpu.memory_space<vmem>>, vector<2x4x256xf32>,
    %c0_15 = arith.constant 0 : index
    %c0_16 = arith.constant 0 : index
    %28 = vector.load %arg4[%c0_15, %c0_16] : memref<4x1xf32, #tpu.memory_space<vmem>>, vector<4x1xf32>
    %c0_17 = arith.constant 0 : index
    %c0_18 = arith.constant 0 : index
    %29 = vector.load %arg5[%c0_17, %c0_18] : memref<4x1xf32, #tpu.memory_space<vmem>>, vector<4x1xf32>
    %cst_19 = arith.constant 0.899999976 : f32
    %30 = vector.broadcast %cst_19 : f32 to vector<4x1xf32>
    %31 = arith.mulf %30, %28 : vector<4x1xf32>
    %cst_20 = arith.constant 1.000000e-01 : f32
    %32 = vector.broadcast %cst_20 : f32 to vector<4x1xf32>
    %33 = arith.mulf %32, %5 : vector<4x1xf32>
    %34 = arith.addf %31, %33 : vector<4x1xf32>
    %c0_21 = arith.constant 0 : index
    %c0_22 = arith.constant 0 : index
    %35 = vector.load %arg7[%c0_21, %c0_22] : memref<4x1xf32, #tpu.memory_space<vmem>>, vector<4x1xf32>
    tpu.vector_store %arg7[%c0_21, %c0_22], %34 {strides = array<i32>} : memref<4x1xf32, #tpu.memory_space<vmem>>, vector<4x1xf32>,
    %cst_23 = arith.constant 0.899999976 : f32
    %36 = vector.broadcast %cst_23 : f32 to vector<4x1xf32>
    %37 = arith.mulf %36, %29 : vector<4x1xf32>
    %cst_24 = arith.constant 1.000000e-01 : f32
    %38 = vector.broadcast %cst_24 : f32 to vector<4x1xf32>
    %39 = arith.mulf %38, %14 : vector<4x1xf32>
    %40 = arith.addf %37, %39 : vector<4x1xf32>
    %c0_25 = arith.constant 0 : index
    %c0_26 = arith.constant 0 : index
    %41 = vector.load %arg8[%c0_25, %c0_26] : memref<4x1xf32, #tpu.memory_space<vmem>>, vector<4x1xf32>
    tpu.vector_store %arg8[%c0_25, %c0_26], %40 {strides = array<i32>} : memref<4x1xf32, #tpu.memory_space<vmem>>, vector<4x1xf32>,
    return
  }
  func.func @transform_0(%arg0: i32) -> (i32, i32, i32) {
    %c0_i32 = arith.constant 0 : i32
    %c0_i32_0 = arith.constant 0 : i32
    %c0_i32_1 = arith.constant 0 : i32
    %c0_i32_2 = arith.constant 0 : i32
    return %c0_i32, %c0_i32_0, %c0_i32_1 : i32, i32, i32
  }
  func.func @transform_1(%arg0: i32) -> (i32, i32) {
    %c0_i32 = arith.constant 0 : i32
    %c0_i32_0 = arith.constant 0 : i32
    %c0_i32_1 = arith.constant 0 : i32
    return %c0_i32, %c0_i32_0 : i32, i32
  }
  func.func @transform_2(%arg0: i32) -> (i32, i32) {
    %c0_i32 = arith.constant 0 : i32
    %c0_i32_0 = arith.constant 0 : i32
    %c0_i32_1 = arith.constant 0 : i32
    return %c0_i32, %c0_i32_0 : i32, i32
  }
  func.func @transform_3(%arg0: i32) -> (i32, i32) {
    %c0_i32 = arith.constant 0 : i32
    %c0_i32_0 = arith.constant 0 : i32
    %c0_i32_1 = arith.constant 0 : i32
    return %c0_i32, %c0_i32_0 : i32, i32
  }
  func.func @transform_4(%arg0: i32) -> (i32, i32) {
    %c0_i32 = arith.constant 0 : i32
    %c0_i32_0 = arith.constant 0 : i32
    %c0_i32_1 = arith.constant 0 : i32
    return %c0_i32, %c0_i32_0 : i32, i32
  }
  func.func @transform_5(%arg0: i32) -> (i32, i32, i32) {
    %c0_i32 = arith.constant 0 : i32
    %c0_i32_0 = arith.constant 0 : i32
    %c0_i32_1 = arith.constant 0 : i32
    %c0_i32_2 = arith.constant 0 : i32
    return %c0_i32, %c0_i32_0, %c0_i32_1 : i32, i32, i32
  }
  func.func @transform_6(%arg0: i32) -> (i32, i32) {
    %c0_i32 = arith.constant 0 : i32
    %c0_i32_0 = arith.constant 0 : i32
    %c0_i32_1 = arith.constant 0 : i32
    return %c0_i32, %c0_i32_0 : i32, i32
  }
  func.func @transform_7(%arg0: i32) -> (i32, i32) {
    %c0_i32 = arith.constant 0 : i32
    %c0_i32_0 = arith.constant 0 : i32
    %c0_i32_1 = arith.constant 0 : i32
    return %c0_i32, %c0_i32_0 : i32, i32
  }
}

</mosaic_0001>

<bundles_post_ra>
// kernel: tpu_custom_call.1
= control target key start
LH: loop header
LB: loop body
LE: loop exit
PB: predicated region body
PF: predicated region fallthrough
CT: control target
= control target key end

     0   :  { %vm32_vm0 = vcmask 1043456   ;;  %s276_s0 = inlined_call_operand.vmem [shape: f32[2,4,256], index: 0, kind: input, shape index: {}]   ;;  %s277_s1 = inlined_call_operand.vmem [shape: f32[4,1], index: 1, kind: input, shape index: {}]   ;;  %s278_s2 = inlined_call_operand.vmem [shape: f32[4,1], index: 2, kind: input, shape index: {}]   ;;  %s279_s3 = inlined_call_operand.vmem [shape: f32[4,1], index: 3, kind: input, shape index: {}]   ;;  %s280_s4 = inlined_call_operand.vmem [shape: f32[4,1], index: 4, kind: input, shape index: {}]   ;;  %s281_s5 = inlined_call_operand.hbm [shape: f32[2,4,256], index: 5, kind: output, shape index: {0}]   ;;  %s282_s6 = inlined_call_operand.vmem [shape: f32[4,1], index: 6, kind: output, shape index: {1}]   ;;  %s283_s7 = inlined_call_operand.vmem [shape: f32[4,1], index: 7, kind: output, shape index: {2}]  }
   0x1   :  { %v24_v0 = vld [vmem:[%s276_s0] sm:$0xff]  ;;  %v25_v1 = vld [vmem:[%s276_s0 + $0x8] sm:$0xff] }
   0x2   :  { %v28_v2 = vcombine.high %v24_v0, %v24_v0  ;;  %v29_v3 = vcombine.high %v25_v1, %v25_v1  ;;  %v33_v4 = vsel %vm32_vm0, %v24_v0, 0.0  ;;  %v34_v5 = vsel %vm32_vm0, %v25_v1, 0.0 }
   0x3   :  { %13 = vsyncpa [#allocation3], 0  ;;  %v35_v6 = vadd.f32 %v34_v5, %v33_v4  ;;  %v181_v13 = vmov 839922192   ;;  %v49_v15 = vlaneseq  ;;  %v111_v18 = vld [vmem:[%s279_s3] sm:$0xf] }
   0x4   :  { %v36_v7 = vsel %vm32_vm0, %v28_v2, 0.0  ;;  %v37_v8 = vsel %vm32_vm0, %v29_v3, 0.0  ;;  %v47_v14 = vunpack.c.l.s4 %v181_v13  ;;  %v113_v21 = vmul.f32 0.9, %v111_v18  ;;  %v112_v42 = vld [vmem:[%s280_s4] sm:$0xf] }
   0x5   :  { %v38_v9 = vadd.f32 %v37_v8, %v36_v7  ;;  %v39_v10 = vsel %vm32_vm0, %v35_v6, 0.0  ;;  %v50_v17 = vshrl.u32 %v49_v15, 7  ;;  %vm116_vm1 = vcmask 3072   ;;  %v78_v49 = vld [vmem:[%s277_s1] sm:$0xf]  ;;  %s183_s13 = smov [#allocation2]  }
   0x6   :  { %v48_v16 = vunpack.c.0.s8 %v47_v14  ;;  %v182_v41 = vmov 0   ;;  %v118_v44 = vmul.f32 0.9, %v112_v42  ;;  %v79_v52 = vld [vmem:[%s278_s2] sm:$0xf]  ;;  %s127_s14 = sshll.u32 %s183_s13, 4  ;;  %s128_s14 = int_to_ptr.vmem [resolvable:$true] %s127_s14 }
   0x7   :  { %v40_v11 = vsel %vm32_vm0, %v38_v9, 0.0  ;;  %151 = vset.pattern.permute.xlu1 %v182_v41  ;;  %152 = vset.pattern.permute.xlu0 %v182_v41  ;;  %s157_s1 = scalar_lea.vmem %s128_s14, 256  ;;  %p162_p1 = scmp.lt.s32.totalorder %s128_s14, %s128_s14 }
   0x8   :  { %v41_v12 = vadd.f32 %v40_v11, %v39_v10  ;;  %v51_v19 = vsub.s32 %v48_v16, %v50_v17  ;;  %p158_p0 = scmp.ne.s32.totalorder %s128_s14, %s157_s1  ;;  %p163_p2 = scmp.lt.s32.totalorder %s157_s1, %s157_s1 }
   0xa   :  { %42 = vadd.xlane.f32.xlu0 %v41_v12  ;;  %p164_p3 = por %p163_p2, %p162_p1 }
   0xc   :  { %p165_p4 = pnand %p164_p3, %p158_p0 }
  0x97   :  { %v43_v20 = vpop.xlane.xlu0 %42 }
  0x98   :  { %v44_v22 = vmul.f32 0.001953125, %v43_v20 }
  0x9a   :  { %v52_v23 = vrot.slane %v44_v22, %v51_v19  ;;  %v114_v24 = vmul.f32 0.1, %v44_v22 }
  0x9c   :  { %v54_v25 = vsub.f32 %v24_v0, %v52_v23  ;;  %v55_v26 = vsub.f32 %v25_v1, %v52_v23  ;;  %v115_v27 = vadd.f32 %v114_v24, %v113_v21 }
  0x9e   :  { %v56_v28 = vmul.f32 %v54_v25, %v54_v25  ;;  %v57_v29 = vmul.f32 %v55_v26, %v55_v26  ;;  %117 = vst.msk [vmem:[%s282_s6] sm:$0xf] %vm116_vm1, %v115_v27 }
  0xa0   :  { %v60_v30 = vcombine.high %v56_v28, %v56_v28  ;;  %v61_v31 = vcombine.high %v57_v29, %v57_v29  ;;  %v64_v32 = vsel %vm32_vm0, %v56_v28, 0.0  ;;  %v65_v33 = vsel %vm32_vm0, %v57_v29, 0.0 }
  0xa1   :  { %v66_v34 = vadd.f32 %v65_v33, %v64_v32 }
  0xa2   :  { %v67_v35 = vsel %vm32_vm0, %v60_v30, 0.0  ;;  %v68_v36 = vsel %vm32_vm0, %v61_v31, 0.0 }
  0xa3   :  { %v69_v37 = vadd.f32 %v68_v36, %v67_v35  ;;  %v70_v38 = vsel %vm32_vm0, %v66_v34, 0.0 }
  0xa5   :  { %v71_v39 = vsel %vm32_vm0, %v69_v37, 0.0 }
  0xa6   :  { %v72_v40 = vadd.f32 %v71_v39, %v70_v38 }
  0xa8   :  { %73 = vadd.xlane.f32.xlu0 %v72_v40 }
 0x135   :  { %v74_v43 = vpop.xlane.xlu0 %73 }
 0x136   :  { %v75_v45 = vmul.f32 0.001953125, %v74_v43 }
 0x138   :  { %v76_v46 = vadd.f32 1e-05, %v75_v45  ;;  %v119_v47 = vmul.f32 0.1, %v75_v45 }
 0x13a   :  { %155 = vrsqrt.f32 %v76_v46  ;;  %v120_v48 = vadd.f32 %v119_v47, %v118_v44 }
 0x13c   :  { %121 = vst.msk [vmem:[%s283_s7] sm:$0xf] %vm116_vm1, %v120_v48 }
 0x144   :  { %v156_v50 = vpop.eup %155 }
 0x145   :  { %v80_v51 = vmul.f32 %v156_v50, %v78_v49 }
 0x147   :  { %83 = vperm.xlu1 %151, %v80_v51  }
 0x14b   :  { %97 = vperm.xlu1 %151, %v79_v52  }
 0x1c6   :  { %v84_v53 = vpop.permute.xlu1 %83 }
 0x1c7   :  { %v91_v54 = vrot.slane %v84_v53, %v51_v19 }
 0x1c9   :  { %v93_v56 = vmul.f32 %v91_v54, %v54_v25  ;;  %v94_v57 = vmul.f32 %v91_v54, %v55_v26 }
 0x1ca   :  { %v98_v55 = vpop.permute.xlu1 %97 }
 0x1cb   :  { %v105_v58 = vrot.slane %v98_v55, %v51_v19 }
 0x1cd   :  { %v107_v59 = vadd.f32 %v105_v58, %v93_v56  ;;  %v108_v60 = vadd.f32 %v105_v58, %v94_v57 }
 0x1cf   :  { %109 = vst [vmem:[#allocation2] sm:$0xff] %v107_v59  ;;  %110 = vst [vmem:[#allocation2 + $0x8] sm:$0xff] %v108_v60 }
 0x1d0   :  { %168 = shalt.err (!%p165_p4)
}
 0x1d1   :  { %s169_s15 = scalar_lea.hbm %s281_s5, 256 }
 0x1d2   :  { %p170_p5 = scmp.ne.s32.totalorder %s281_s5, %s169_s15  ;;  %p173_p6 = scmp.lt.u32.totalorder %s169_s15, %s281_s5 }
 0x1d4   :  { %p175_p7 = pnand %p173_p6, %p170_p5 }
 0x1d6   :  { %178 = shalt.err (!%p175_p7)
}
 0x1d7   :  { %s184_s20 = smov 128   ;;  %s185_s21 = smov 8  }
 0x1d8   :  { %133 = dma.vmem_to_hbm [thread:$0]  %s128_s14, 256, %s281_s5, [#allocation3], %s184_s20, %s184_s20, %s185_s21  }
 0x1d9   :  { %179 = dma.done.wait [#allocation3], 256  }
 0x1da   :  { %180 = vsyncadd [#allocation3], 4294967040 }
 0x1db   :  { %145 = vsyncpa [#allocation3], 1 }

</bundles_post_ra>
